<compile_context>
chip_gen: v7x
topology: tpu7x:2x2x1
jax: 0.10.0
libtpu: 0.0.40
codegen_flags: <defaults>
</compile_context>

<pallas_src>
import functools
import math

import jax
import jax.numpy as jnp
from jax.experimental import pallas as pl
from jax.experimental.pallas import tpu as pltpu


def _mha_kernel(xq_ref, xk_ref, xv_ref, bias_ref,
                wq_ref, bq_ref, wk_ref, bk_ref, wv_ref, bv_ref,
                wo_ref, bo_ref,
                o_ref,
                kp_ref, vp_ref,
                *, n_heads, d_k, compute_dtype, exact_softmax):
    qi = pl.program_id(1)  # query-tile index

    # ---- project K/V for this batch element once; reuse across query tiles.
    @pl.when(qi == 0)
    def _():
        xk = xk_ref[0].astype(compute_dtype)                          # (S, D)
        xv = xv_ref[0].astype(compute_dtype)                          # (S, D)
        kp = jnp.dot(xk, wk_ref[...], preferred_element_type=jnp.float32) + bk_ref[...]
        vp = jnp.dot(xv, wv_ref[...], preferred_element_type=jnp.float32) + bv_ref[...]
        kp_ref[...] = kp.astype(kp_ref.dtype)                         # (S, D)
        vp_ref[...] = vp.astype(vp_ref.dtype)                         # (S, D)

    # ---- Q projection for this query tile (scale already folded into Wq/bq).
    xq = xq_ref[0].astype(compute_dtype)                              # (TQ, D)
    q = jnp.dot(xq, wq_ref[...], preferred_element_type=jnp.float32) + bq_ref[...]
    q = q.astype(compute_dtype)                                       # (TQ, D)

    bias = bias_ref[0].astype(jnp.float32)                            # (TQ, S)
    kp = kp_ref[...]
    vp = vp_ref[...]

    # ---- per-head attention: static loop, static d_k lane slices.
    # TODO(synk): for many heads / long S convert to a lax.fori_loop writing
    # into a (TQ, D) scratch to bound vreg live ranges.
    ctx_parts = []
    for h in range(n_heads):
        sl = slice(h * d_k, (h + 1) * d_k)
        s = jax.lax.dot_general(
            q[:, sl], kp[:, sl],
            dimension_numbers=(((1,), (1,)), ((), ())),
            preferred_element_type=jnp.float32)                       # (TQ, S)
        s = s + bias                                                  # additive mask
        s = s - jnp.max(s, axis=-1, keepdims=True)
        p = jnp.exp(s)
        denom = jnp.sum(p, axis=-1, keepdims=True)
        if exact_softmax:
            p = p / denom
        else:
            p = p * pl.reciprocal(denom, approx=True)                 # EUP slot
        ctx_parts.append(jnp.dot(p.astype(compute_dtype), vp[:, sl],
                                 preferred_element_type=jnp.float32)) # (TQ, d_k)

    ctx = jnp.concatenate(ctx_parts, axis=-1).astype(compute_dtype)   # (TQ, D)

    # ---- single full-width output projection.
    out = jnp.dot(ctx, wo_ref[...], preferred_element_type=jnp.float32) + bo_ref[...]
    o_ref[0] = out.astype(o_ref.dtype)


def _vmem_budget_bytes():
    """Usable VMEM for this generation (conservative fallback = v7x 64 MiB/TC)."""
    try:
        info = pltpu.get_tpu_info()
        cap = getattr(info, "vmem_capacity_bytes", None)
        if cap:
            return int(cap * 0.8)
    except Exception:
        pass
    return int(64 * 1024 * 1024 * 0.8)


def _vmem_estimate(tq, S, D, in_bytes, w_bytes, c_bytes, out_bytes):
    est = 2 * in_bytes * tq * D              # xq block (double-buffered)
    est += 2 * 2 * in_bytes * S * D          # xk, xv blocks
    est += 2 * 2 * tq * S                    # bf16 additive-mask block
    est += 2 * (4 * w_bytes * D * D + 4 * 4 * D)   # resident weights + f32 biases
    est += 2 * out_bytes * tq * D            # output block
    est += 2 * c_bytes * S * D               # K/V scratch
    est += 8 * tq * D                        # transient ctx / head-slice headroom
    return est


def multi_head_attention(query, key, value, mask, params, n_heads,
                         compute_dtype=jnp.bfloat16):
    """query/key/value: [B, S, D]; mask: [B, 1, S, S] or [B, S, S] or None.

    params = (wq, bq, wk, bk, wv, bv, wo, bo) in PyTorch nn.Linear layout
    (weights are (out_features, in_features)).
    compute_dtype=jnp.float32 matches PyTorch numerics (exact softmax divide);
    the bfloat16 default feeds the MXU native inputs with f32 accumulation.
    """
    B, S, D = query.shape
    assert D % n_heads == 0
    d_k = D // n_heads
    wq, bq, wk, bk, wv, bv, wo, bo = params

    # --- one-time host relayout: transpose to (in, out), fold 1/sqrt(d_k) into
    # the Q projection, pre-cast weights to compute_dtype (biases stay f32 —
    # they are added to f32 accumulators).
    scale = 1.0 / math.sqrt(d_k)
    wq_t = (wq.T * scale).astype(compute_dtype)
    bq_2 = (bq * scale).astype(jnp.float32).reshape(1, D)
    wk_t = wk.T.astype(compute_dtype)
    bk_2 = bk.astype(jnp.float32).reshape(1, D)
    wv_t = wv.T.astype(compute_dtype)
    bv_2 = bv.astype(jnp.float32).reshape(1, D)
    wo_t = wo.T.astype(compute_dtype)
    bo_2 = bo.astype(jnp.float32).reshape(1, D)

    # --- mask -> compact bf16 additive bias (0 keep / -1e9 masked).
    # TODO(synk): for purely causal masks this could be generated in-kernel
    # with broadcasted_iota instead of DMAing a [B, S, S] bias.
    if mask is None:
        bias = jnp.zeros((B, S, S), jnp.bfloat16)
    else:
        if mask.ndim == 4:
            if mask.shape[1] != 1:
                raise NotImplementedError(
                    "per-head masks [B, H, S, S] are not supported; "
                    "pass [B, 1, S, S] or [B, S, S]")
            m2 = mask[:, 0]
        else:
            m2 = mask
        bias = jnp.where(m2 == 0, -1e9, 0.0).astype(jnp.bfloat16)

    # --- per-generation VMEM budget and query-tile selection.
    in_bytes = jnp.dtype(query.dtype).itemsize
    w_bytes = jnp.dtype(compute_dtype).itemsize
    c_bytes = jnp.dtype(compute_dtype).itemsize
    out_bytes = jnp.dtype(query.dtype).itemsize

    budget = _vmem_budget_bytes()
    cands = [c for c in (512, 256, 128) if S % c == 0] or [S]
    TQ = cands[-1]
    for c in cands:
        if _vmem_estimate(c, S, D, in_bytes, w_bytes, c_bytes, out_bytes) <= budget:
            TQ = c
            break
    nQ = S // TQ
    est = _vmem_estimate(TQ, S, D, in_bytes, w_bytes, c_bytes, out_bytes)
    vmem_limit = int(min(budget, max(2 * est, 8 * 1024 * 1024)))

    kernel = functools.partial(
        _mha_kernel,
        n_heads=n_heads, d_k=d_k,
        compute_dtype=compute_dtype,
        exact_softmax=(jnp.dtype(compute_dtype) == jnp.dtype(jnp.float32)))

    xq_spec = pl.BlockSpec((1, TQ, D), lambda b, q: (b, q, 0))
    xkv_spec = pl.BlockSpec((1, S, D), lambda b, q: (b, 0, 0))
    bias_spec = pl.BlockSpec((1, TQ, S), lambda b, q: (b, q, 0))
    # Resident full-array weight / bias blocks: constant index map => Pallas
    # fetches them once and never re-DMAs.  (pl.Buffered(1) would additionally
    # halve their VMEM footprint; omitted here for portability.)
    w_spec = pl.BlockSpec((D, D), lambda b, q: (0, 0))
    b_spec = pl.BlockSpec((1, D), lambda b, q: (0, 0))
    out_spec = pl.BlockSpec((1, TQ, D), lambda b, q: (b, q, 0))

    return pl.pallas_call(
        kernel,
        out_shape=jax.ShapeDtypeStruct((B, S, D), query.dtype),
        grid_spec=pltpu.PrefetchScalarGridSpec(
            num_scalar_prefetch=0,
            grid=(B, nQ),
            in_specs=[xq_spec, xkv_spec, xkv_spec, bias_spec,
                      w_spec, b_spec, w_spec, b_spec,
                      w_spec, b_spec, w_spec, b_spec],
            out_specs=out_spec,
            scratch_shapes=[pltpu.VMEM((S, D), compute_dtype),   # projected K
                            pltpu.VMEM((S, D), compute_dtype)]), # projected V
        compiler_params=pltpu.CompilerParams(
            dimension_semantics=("parallel", "arbitrary"),
            vmem_limit_bytes=vmem_limit),
    )(query, key, value, bias,
      wq_t, bq_2, wk_t, bk_2, wv_t, bv_2, wo_t, bo_2)


def _reference(query, key, value, mask, params, n_heads):
    """Pure-JAX reference mirroring the PyTorch forward (dropout in eval mode)."""
    B, S, D = query.shape
    d_k = D // n_heads
    wq, bq, wk, bk, wv, bv, wo, bo = params

    def transform(x, w, b):
        out = x @ w.T + b
        out = out.reshape(B, S, n_heads, d_k)
        return out.transpose(0, 2, 1, 3)

    q = transform(query, wq, bq)
    k = transform(key, wk, bk)
    v = transform(value, wv, bv)

    scores = jnp.einsum("bhqd,bhkd->bhqk", q, k) / math.sqrt(d_k)
    if mask is not None:
        scores = jnp.where(mask == 0, -1e9, scores)
    probs = jax.nn.softmax(scores, axis=-1)
    out = jnp.einsum("bhqk,bhkd->bhqd", probs, v)
    out = out.transpose(0, 2, 1, 3).reshape(B, S, D)
    return out @ wo.T + bo


if __name__ == "__main__":
    B, S, D, H = 2, 8, 32, 4

    key0 = jax.random.PRNGKey(0)
    keys = jax.random.split(key0, 12)

    scale = 1.0 / math.sqrt(D)
    wq = jax.random.uniform(keys[0], (D, D), jnp.float32, -scale, scale)
    bq = jax.random.uniform(keys[1], (D,), jnp.float32, -scale, scale)
    wk = jax.random.uniform(keys[2], (D, D), jnp.float32, -scale, scale)
    bk = jax.random.uniform(keys[3], (D,), jnp.float32, -scale, scale)
    wv = jax.random.uniform(keys[4], (D, D), jnp.float32, -scale, scale)
    bv = jax.random.uniform(keys[5], (D,), jnp.float32, -scale, scale)
    wo = jax.random.uniform(keys[6], (D, D), jnp.float32, -scale, scale)
    bo = jax.random.uniform(keys[7], (D,), jnp.float32, -scale, scale)
    params = (wq, bq, wk, bk, wv, bv, wo, bo)

    query = jax.random.normal(keys[8], (B, S, D), jnp.float32)
    key_t = jax.random.normal(keys[9], (B, S, D), jnp.float32)
    value = jax.random.normal(keys[10], (B, S, D), jnp.float32)

    # Causal mask, [B, 1, S, S]; zeros above the diagonal get masked.
    causal = jnp.tril(jnp.ones((S, S), jnp.float32))
    mask = jnp.broadcast_to(causal, (B, 1, S, S))

    ref = _reference(query, key_t, value, mask, params, H)

    # f32 compute path: matches PyTorch numerics (exact softmax divide).
    out_f32 = jax.block_until_ready(
        multi_head_attention(query, key_t, value, mask, params, H,
                             compute_dtype=jnp.float32))
    assert out_f32.shape == (B, S, D)
    assert jnp.allclose(out_f32, ref, atol=1e-4, rtol=1e-4), (
        f"f32 max err {jnp.max(jnp.abs(out_f32 - ref))}")

    # bf16 compute path (default; MXU-native inputs on v6e/v7x, f32 accum).
    out_bf16 = jax.block_until_ready(
        multi_head_attention(query, key_t, value, mask, params, H))
    assert out_bf16.shape == (B, S, D)
    assert jnp.allclose(out_bf16, ref, atol=6e-2, rtol=6e-2), (
        f"bf16 max err {jnp.max(jnp.abs(out_bf16 - ref))}")

    print("KERNEL_OK")
</pallas_src>

<mosaic_0001>
module attributes {stable_mosaic.version = 11 : i64} {
  func.func @_mha_kernel(%arg0: i32, %arg1: i32, %arg2: memref<1x8x32xf32, #tpu.memory_space<vmem>>, %arg3: memref<1x8x32xf32, #tpu.memory_space<vmem>>, %arg4: memref<1x8x32xf32, #tpu.memory_space<vmem>>, %arg5: memref<1x8x8xbf16, #tpu.memory_space<vmem>>, %arg6: memref<32x32xf32, #tpu.memory_space<vmem>>, %arg7: memref<1x32xf32, #tpu.memory_space<vmem>>, %arg8: memref<32x32xf32, #tpu.memory_space<vmem>>, %arg9: memref<1x32xf32, #tpu.memory_space<vmem>>, %arg10: memref<32x32xf32, #tpu.memory_space<vmem>>, %arg11: memref<1x32xf32, #tpu.memory_space<vmem>>, %arg12: memref<32x32xf32, #tpu.memory_space<vmem>>, %arg13: memref<1x32xf32, #tpu.memory_space<vmem>>, %arg14: memref<1x8x32xf32, #tpu.memory_space<vmem>>, %arg15: memref<8x32xf32, #tpu.memory_space<vmem>>, %arg16: memref<8x32xf32, #tpu.memory_space<vmem>>) attributes {dimension_semantics = [#tpu.dimension_semantics<parallel>, #tpu.dimension_semantics<arbitrary>], iteration_bounds = array<i64: 2, 1>, scalar_prefetch = 0 : i64, scratch_operands = 2 : i64, tpu.core_type = #tpu.core_type<tc>, window_params = [{transform_indices = @transform_0, window_bounds = array<i64: 1, 8, 32>}, {transform_indices = @transform_1, window_bounds = array<i64: 1, 8, 32>}, {transform_indices = @transform_2, window_bounds = array<i64: 1, 8, 32>}, {transform_indices = @transform_3, window_bounds = array<i64: 1, 8, 8>}, {pipeline_mode = #tpu.pipeline_mode<synchronous>, transform_indices = @transform_4, window_bounds = array<i64: 32, 32>}, {pipeline_mode = #tpu.pipeline_mode<synchronous>, transform_indices = @transform_5, window_bounds = array<i64: 1, 32>}, {pipeline_mode = #tpu.pipeline_mode<synchronous>, transform_indices = @transform_6, window_bounds = array<i64: 32, 32>}, {pipeline_mode = #tpu.pipeline_mode<synchronous>, transform_indices = @transform_7, window_bounds = array<i64: 1, 32>}, {pipeline_mode = #tpu.pipeline_mode<synchronous>, transform_indices = @transform_8, window_bounds = array<i64: 32, 32>}, {pipeline_mode = #tpu.pipeline_mode<synchronous>, transform_indices = @transform_9, window_bounds = array<i64: 1, 32>}, {pipeline_mode = #tpu.pipeline_mode<synchronous>, transform_indices = @transform_10, window_bounds = array<i64: 32, 32>}, {pipeline_mode = #tpu.pipeline_mode<synchronous>, transform_indices = @transform_11, window_bounds = array<i64: 1, 32>}, {transform_indices = @transform_12, window_bounds = array<i64: 1, 8, 32>}]} {
    %c0_i32 = arith.constant 0 : i32
    %0 = arith.cmpi eq, %arg1, %c0_i32 : i32
    %1 = arith.extui %0 : i1 to i32
    %c0_i32_0 = arith.constant 0 : i32
    %2 = arith.cmpi ne, %1, %c0_i32_0 : i32
    scf.if %2 {
      %c0_38 = arith.constant 0 : index
      %c0_39 = arith.constant 0 : index
      %c0_40 = arith.constant 0 : index
      %84 = vector.load %arg3[%c0_38, %c0_39, %c0_40] : memref<1x8x32xf32, #tpu.memory_space<vmem>>, vector<1x8x32xf32>
      %85 = vector.shape_cast %84 : vector<1x8x32xf32> to vector<8x32xf32>
      %c0_41 = arith.constant 0 : index
      %c0_42 = arith.constant 0 : index
      %c0_43 = arith.constant 0 : index
      %86 = vector.load %arg4[%c0_41, %c0_42, %c0_43] : memref<1x8x32xf32, #tpu.memory_space<vmem>>, vector<1x8x32xf32>
      %87 = vector.shape_cast %86 : vector<1x8x32xf32> to vector<8x32xf32>
      %c0_44 = arith.constant 0 : index
      %c0_45 = arith.constant 0 : index
      %88 = vector.load %arg8[%c0_44, %c0_45] : memref<32x32xf32, #tpu.memory_space<vmem>>, vector<32x32xf32>
      %cst_46 = arith.constant dense<0.000000e+00> : vector<8x32xf32>
      %89 = tpu.matmul %85, %88, %cst_46 {dimension_numbers = #tpu.dot_dimension_numbers<[1], [0], [0], [1], [0, 0, 1, 1], [], []>} : vector<8x32xf32>, vector<32x32xf32>, vector<8x32xf32> -> vector<8x32xf32>
      %c0_47 = arith.constant 0 : index
      %c0_48 = arith.constant 0 : index
      %90 = vector.load %arg9[%c0_47, %c0_48] : memref<1x32xf32, #tpu.memory_space<vmem>>, vector<1x32xf32>
      %91 = vector.broadcast %90 : vector<1x32xf32> to vector<8x32xf32>
      %92 = arith.addf %89, %91 : vector<8x32xf32>
      %c0_49 = arith.constant 0 : index
      %c0_50 = arith.constant 0 : index
      %93 = vector.load %arg10[%c0_49, %c0_50] : memref<32x32xf32, #tpu.memory_space<vmem>>, vector<32x32xf32>
      %cst_51 = arith.constant dense<0.000000e+00> : vector<8x32xf32>
      %94 = tpu.matmul %87, %93, %cst_51 {dimension_numbers = #tpu.dot_dimension_numbers<[1], [0], [0], [1], [0, 0, 1, 1], [], []>} : vector<8x32xf32>, vector<32x32xf32>, vector<8x32xf32> -> vector<8x32xf32>
      %c0_52 = arith.constant 0 : index
      %c0_53 = arith.constant 0 : index
      %95 = vector.load %arg11[%c0_52, %c0_53] : memref<1x32xf32, #tpu.memory_space<vmem>>, vector<1x32xf32>
      %96 = vector.broadcast %95 : vector<1x32xf32> to vector<8x32xf32>
      %97 = arith.addf %94, %96 : vector<8x32xf32>
      %c0_54 = arith.constant 0 : index
      %c0_55 = arith.constant 0 : index
      %98 = vector.load %arg15[%c0_54, %c0_55] : memref<8x32xf32, #tpu.memory_space<vmem>>, vector<8x32xf32>
      tpu.vector_store %arg15[%c0_54, %c0_55], %92 {strides = array<i32>} : memref<8x32xf32, #tpu.memory_space<vmem>>, vector<8x32xf32>,
      %c0_56 = arith.constant 0 : index
      %c0_57 = arith.constant 0 : index
      %99 = vector.load %arg16[%c0_56, %c0_57] : memref<8x32xf32, #tpu.memory_space<vmem>>, vector<8x32xf32>
      tpu.vector_store %arg16[%c0_56, %c0_57], %97 {strides = array<i32>} : memref<8x32xf32, #tpu.memory_space<vmem>>, vector<8x32xf32>,
    } else {
    }
    %c0 = arith.constant 0 : index
    %c0_1 = arith.constant 0 : index
    %c0_2 = arith.constant 0 : index
    %3 = vector.load %arg2[%c0, %c0_1, %c0_2] : memref<1x8x32xf32, #tpu.memory_space<vmem>>, vector<1x8x32xf32>
    %4 = vector.shape_cast %3 : vector<1x8x32xf32> to vector<8x32xf32>
    %c0_3 = arith.constant 0 : index
    %c0_4 = arith.constant 0 : index
    %5 = vector.load %arg6[%c0_3, %c0_4] : memref<32x32xf32, #tpu.memory_space<vmem>>, vector<32x32xf32>
    %cst = arith.constant dense<0.000000e+00> : vector<8x32xf32>
    %6 = tpu.matmul %4, %5, %cst {dimension_numbers = #tpu.dot_dimension_numbers<[1], [0], [0], [1], [0, 0, 1, 1], [], []>} : vector<8x32xf32>, vector<32x32xf32>, vector<8x32xf32> -> vector<8x32xf32>
    %c0_5 = arith.constant 0 : index
    %c0_6 = arith.constant 0 : index
    %7 = vector.load %arg7[%c0_5, %c0_6] : memref<1x32xf32, #tpu.memory_space<vmem>>, vector<1x32xf32>
    %8 = vector.broadcast %7 : vector<1x32xf32> to vector<8x32xf32>
    %9 = arith.addf %6, %8 : vector<8x32xf32>
    %c0_7 = arith.constant 0 : index
    %c0_8 = arith.constant 0 : index
    %c0_9 = arith.constant 0 : index
    %10 = vector.load %arg5[%c0_7, %c0_8, %c0_9] : memref<1x8x8xbf16, #tpu.memory_space<vmem>>, vector<1x8x8xbf16>
    %11 = vector.shape_cast %10 : vector<1x8x8xbf16> to vector<8x8xbf16>
    %12 = arith.extf %11 : vector<8x8xbf16> to vector<8x8xf32>
    %c0_10 = arith.constant 0 : index
    %c0_11 = arith.constant 0 : index
    %13 = vector.load %arg15[%c0_10, %c0_11] : memref<8x32xf32, #tpu.memory_space<vmem>>, vector<8x32xf32>
    %c0_12 = arith.constant 0 : index
    %c0_13 = arith.constant 0 : index
    %14 = vector.load %arg16[%c0_12, %c0_13] : memref<8x32xf32, #tpu.memory_space<vmem>>, vector<8x32xf32>
    %15 = vector.extract_strided_slice %9 {offsets = [0, 0], sizes = [8, 8], strides = [1, 1]} : vector<8x32xf32> to vector<8x8xf32>
    %16 = vector.extract_strided_slice %13 {offsets = [0, 0], sizes = [8, 8], strides = [1, 1]} : vector<8x32xf32> to vector<8x8xf32>
    %cst_14 = arith.constant dense<0.000000e+00> : vector<8x8xf32>
    %17 = tpu.matmul %15, %16, %cst_14 {dimension_numbers = #tpu.dot_dimension_numbers<[1], [1], [0], [0], [0, 0, 1, 0], [], []>} : vector<8x8xf32>, vector<8x8xf32>, vector<8x8xf32> -> vector<8x8xf32>
    %18 = arith.addf %17, %12 : vector<8x8xf32>
    %cst_15 = arith.constant dense<0xFF800000> : vector<8xf32>
    %19 = vector.multi_reduction <maximumf>, %18, %cst_15 [1] : vector<8x8xf32> to vector<8xf32>
    %20 = vector.shape_cast %19 : vector<8xf32> to vector<8x1xf32>
    %21 = vector.broadcast %20 : vector<8x1xf32> to vector<8x8xf32>
    %22 = arith.subf %18, %21 : vector<8x8xf32>
    %23 = math.exp %22 : vector<8x8xf32>
    %cst_16 = arith.constant dense<0.000000e+00> : vector<8xf32>
    %24 = vector.multi_reduction <add>, %23, %cst_16 [1] : vector<8x8xf32> to vector<8xf32>
    %25 = vector.shape_cast %24 : vector<8xf32> to vector<8x1xf32>
    %26 = vector.broadcast %25 : vector<8x1xf32> to vector<8x8xf32>
    %27 = arith.divf %23, %26 : vector<8x8xf32>
    %28 = vector.extract_strided_slice %14 {offsets = [0, 0], sizes = [8, 8], strides = [1, 1]} : vector<8x32xf32> to vector<8x8xf32>
    %cst_17 = arith.constant dense<0.000000e+00> : vector<8x8xf32>
    %29 = tpu.matmul %27, %28, %cst_17 {dimension_numbers = #tpu.dot_dimension_numbers<[1], [0], [0], [1], [0, 0, 1, 1], [], []>} : vector<8x8xf32>, vector<8x8xf32>, vector<8x8xf32> -> vector<8x8xf32>
    %30 = vector.extract_strided_slice %9 {offsets = [0, 8], sizes = [8, 8], strides = [1, 1]} : vector<8x32xf32> to vector<8x8xf32>
    %31 = vector.extract_strided_slice %13 {offsets = [0, 8], sizes = [8, 8], strides = [1, 1]} : vector<8x32xf32> to vector<8x8xf32>
    %cst_18 = arith.constant dense<0.000000e+00> : vector<8x8xf32>
    %32 = tpu.matmul %30, %31, %cst_18 {dimension_numbers = #tpu.dot_dimension_numbers<[1], [1], [0], [0], [0, 0, 1, 0], [], []>} : vector<8x8xf32>, vector<8x8xf32>, vector<8x8xf32> -> vector<8x8xf32>
    %33 = arith.addf %32, %12 : vector<8x8xf32>
    %cst_19 = arith.constant dense<0xFF800000> : vector<8xf32>
    %34 = vector.multi_reduction <maximumf>, %33, %cst_19 [1] : vector<8x8xf32> to vector<8xf32>
    %35 = vector.shape_cast %34 : vector<8xf32> to vector<8x1xf32>
    %36 = vector.broadcast %35 : vector<8x1xf32> to vector<8x8xf32>
    %37 = arith.subf %33, %36 : vector<8x8xf32>
    %38 = math.exp %37 : vector<8x8xf32>
    %cst_20 = arith.constant dense<0.000000e+00> : vector<8xf32>
    %39 = vector.multi_reduction <add>, %38, %cst_20 [1] : vector<8x8xf32> to vector<8xf32>
    %40 = vector.shape_cast %39 : vector<8xf32> to vector<8x1xf32>
    %41 = vector.broadcast %40 : vector<8x1xf32> to vector<8x8xf32>
    %42 = arith.divf %38, %41 : vector<8x8xf32>
    %43 = vector.extract_strided_slice %14 {offsets = [0, 8], sizes = [8, 8], strides = [1, 1]} : vector<8x32xf32> to vector<8x8xf32>
    %cst_21 = arith.constant dense<0.000000e+00> : vector<8x8xf32>
    %44 = tpu.matmul %42, %43, %cst_21 {dimension_numbers = #tpu.dot_dimension_numbers<[1], [0], [0], [1], [0, 0, 1, 1], [], []>} : vector<8x8xf32>, vector<8x8xf32>, vector<8x8xf32> -> vector<8x8xf32>
    %45 = vector.extract_strided_slice %9 {offsets = [0, 16], sizes = [8, 8], strides = [1, 1]} : vector<8x32xf32> to vector<8x8xf32>
    %46 = vector.extract_strided_slice %13 {offsets = [0, 16], sizes = [8, 8], strides = [1, 1]} : vector<8x32xf32> to vector<8x8xf32>
    %cst_22 = arith.constant dense<0.000000e+00> : vector<8x8xf32>
    %47 = tpu.matmul %45, %46, %cst_22 {dimension_numbers = #tpu.dot_dimension_numbers<[1], [1], [0], [0], [0, 0, 1, 0], [], []>} : vector<8x8xf32>, vector<8x8xf32>, vector<8x8xf32> -> vector<8x8xf32>
    %48 = arith.addf %47, %12 : vector<8x8xf32>
    %cst_23 = arith.constant dense<0xFF800000> : vector<8xf32>
    %49 = vector.multi_reduction <maximumf>, %48, %cst_23 [1] : vector<8x8xf32> to vector<8xf32>
    %50 = vector.shape_cast %49 : vector<8xf32> to vector<8x1xf32>
    %51 = vector.broadcast %50 : vector<8x1xf32> to vector<8x8xf32>
    %52 = arith.subf %48, %51 : vector<8x8xf32>
    %53 = math.exp %52 : vector<8x8xf32>
    %cst_24 = arith.constant dense<0.000000e+00> : vector<8xf32>
    %54 = vector.multi_reduction <add>, %53, %cst_24 [1] : vector<8x8xf32> to vector<8xf32>
    %55 = vector.shape_cast %54 : vector<8xf32> to vector<8x1xf32>
    %56 = vector.broadcast %55 : vector<8x1xf32> to vector<8x8xf32>
    %57 = arith.divf %53, %56 : vector<8x8xf32>
    %58 = vector.extract_strided_slice %14 {offsets = [0, 16], sizes = [8, 8], strides = [1, 1]} : vector<8x32xf32> to vector<8x8xf32>
    %cst_25 = arith.constant dense<0.000000e+00> : vector<8x8xf32>
    %59 = tpu.matmul %57, %58, %cst_25 {dimension_numbers = #tpu.dot_dimension_numbers<[1], [0], [0], [1], [0, 0, 1, 1], [], []>} : vector<8x8xf32>, vector<8x8xf32>, vector<8x8xf32> -> vector<8x8xf32>
    %60 = vector.extract_strided_slice %9 {offsets = [0, 24], sizes = [8, 8], strides = [1, 1]} : vector<8x32xf32> to vector<8x8xf32>
    %61 = vector.extract_strided_slice %13 {offsets = [0, 24], sizes = [8, 8], strides = [1, 1]} : vector<8x32xf32> to vector<8x8xf32>
    %cst_26 = arith.constant dense<0.000000e+00> : vector<8x8xf32>
    %62 = tpu.matmul %60, %61, %cst_26 {dimension_numbers = #tpu.dot_dimension_numbers<[1], [1], [0], [0], [0, 0, 1, 0], [], []>} : vector<8x8xf32>, vector<8x8xf32>, vector<8x8xf32> -> vector<8x8xf32>
    %63 = arith.addf %62, %12 : vector<8x8xf32>
    %cst_27 = arith.constant dense<0xFF800000> : vector<8xf32>
    %64 = vector.multi_reduction <maximumf>, %63, %cst_27 [1] : vector<8x8xf32> to vector<8xf32>
    %65 = vector.shape_cast %64 : vector<8xf32> to vector<8x1xf32>
    %66 = vector.broadcast %65 : vector<8x1xf32> to vector<8x8xf32>
    %67 = arith.subf %63, %66 : vector<8x8xf32>
    %68 = math.exp %67 : vector<8x8xf32>
    %cst_28 = arith.constant dense<0.000000e+00> : vector<8xf32>
    %69 = vector.multi_reduction <add>, %68, %cst_28 [1] : vector<8x8xf32> to vector<8xf32>
    %70 = vector.shape_cast %69 : vector<8xf32> to vector<8x1xf32>
    %71 = vector.broadcast %70 : vector<8x1xf32> to vector<8x8xf32>
    %72 = arith.divf %68, %71 : vector<8x8xf32>
    %73 = vector.extract_strided_slice %14 {offsets = [0, 24], sizes = [8, 8], strides = [1, 1]} : vector<8x32xf32> to vector<8x8xf32>
    %cst_29 = arith.constant dense<0.000000e+00> : vector<8x8xf32>
    %74 = tpu.matmul %72, %73, %cst_29 {dimension_numbers = #tpu.dot_dimension_numbers<[1], [0], [0], [1], [0, 0, 1, 1], [], []>} : vector<8x8xf32>, vector<8x8xf32>, vector<8x8xf32> -> vector<8x8xf32>
    %75 = tpu.concatenate %29, %44, %59, %74 in 1 : vector<8x8xf32>, vector<8x8xf32>, vector<8x8xf32>, vector<8x8xf32> -> vector<8x32xf32>
    %c0_30 = arith.constant 0 : index
    %c0_31 = arith.constant 0 : index
    %76 = vector.load %arg12[%c0_30, %c0_31] : memref<32x32xf32, #tpu.memory_space<vmem>>, vector<32x32xf32>
    %cst_32 = arith.constant dense<0.000000e+00> : vector<8x32xf32>
    %77 = tpu.matmul %75, %76, %cst_32 {dimension_numbers = #tpu.dot_dimension_numbers<[1], [0], [0], [1], [0, 0, 1, 1], [], []>} : vector<8x32xf32>, vector<32x32xf32>, vector<8x32xf32> -> vector<8x32xf32>
    %c0_33 = arith.constant 0 : index
    %c0_34 = arith.constant 0 : index
    %78 = vector.load %arg13[%c0_33, %c0_34] : memref<1x32xf32, #tpu.memory_space<vmem>>, vector<1x32xf32>
    %79 = vector.broadcast %78 : vector<1x32xf32> to vector<8x32xf32>
    %80 = arith.addf %77, %79 : vector<8x32xf32>
    %c0_35 = arith.constant 0 : index
    %c0_36 = arith.constant 0 : index
    %c0_37 = arith.constant 0 : index
    %81 = vector.load %arg14[%c0_35, %c0_36, %c0_37] : memref<1x8x32xf32, #tpu.memory_space<vmem>>, vector<1x8x32xf32>
    %82 = vector.shape_cast %81 : vector<1x8x32xf32> to vector<8x32xf32>
    %83 = vector.shape_cast %80 : vector<8x32xf32> to vector<1x8x32xf32>
    tpu.vector_store %arg14[%c0_35, %c0_36, %c0_37], %83 {strides = array<i32>} : memref<1x8x32xf32, #tpu.memory_space<vmem>>, vector<1x8x32xf32>,
    return
  }
  func.func @transform_0(%arg0: i32, %arg1: i32) -> (i32, i32, i32) {
    %c0_i32 = arith.constant 0 : i32
    %c0_i32_0 = arith.constant 0 : i32
    return %arg0, %arg1, %c0_i32 : i32, i32, i32
  }
  func.func @transform_1(%arg0: i32, %arg1: i32) -> (i32, i32, i32) {
    %c0_i32 = arith.constant 0 : i32
    %c0_i32_0 = arith.constant 0 : i32
    %c0_i32_1 = arith.constant 0 : i32
    return %arg0, %c0_i32, %c0_i32_0 : i32, i32, i32
  }
  func.func @transform_2(%arg0: i32, %arg1: i32) -> (i32, i32, i32) {
    %c0_i32 = arith.constant 0 : i32
    %c0_i32_0 = arith.constant 0 : i32
    %c0_i32_1 = arith.constant 0 : i32
    return %arg0, %c0_i32, %c0_i32_0 : i32, i32, i32
  }
  func.func @transform_3(%arg0: i32, %arg1: i32) -> (i32, i32, i32) {
    %c0_i32 = arith.constant 0 : i32
    %c0_i32_0 = arith.constant 0 : i32
    return %arg0, %arg1, %c0_i32 : i32, i32, i32
  }
  func.func @transform_4(%arg0: i32, %arg1: i32) -> (i32, i32) {
    %c0_i32 = arith.constant 0 : i32
    %c0_i32_0 = arith.constant 0 : i32
    %c0_i32_1 = arith.constant 0 : i32
    return %c0_i32, %c0_i32_0 : i32, i32
  }
  func.func @transform_5(%arg0: i32, %arg1: i32) -> (i32, i32) {
    %c0_i32 = arith.constant 0 : i32
    %c0_i32_0 = arith.constant 0 : i32
    %c0_i32_1 = arith.constant 0 : i32
    return %c0_i32, %c0_i32_0 : i32, i32
  }
  func.func @transform_6(%arg0: i32, %arg1: i32) -> (i32, i32) {
    %c0_i32 = arith.constant 0 : i32
    %c0_i32_0 = arith.constant 0 : i32
    %c0_i32_1 = arith.constant 0 : i32
    return %c0_i32, %c0_i32_0 : i32, i32
  }
  func.func @transform_7(%arg0: i32, %arg1: i32) -> (i32, i32) {
    %c0_i32 = arith.constant 0 : i32
    %c0_i32_0 = arith.constant 0 : i32
    %c0_i32_1 = arith.constant 0 : i32
    return %c0_i32, %c0_i32_0 : i32, i32
  }
  func.func @transform_8(%arg0: i32, %arg1: i32) -> (i32, i32) {
    %c0_i32 = arith.constant 0 : i32
    %c0_i32_0 = arith.constant 0 : i32
    %c0_i32_1 = arith.constant 0 : i32
    return %c0_i32, %c0_i32_0 : i32, i32
  }
  func.func @transform_9(%arg0: i32, %arg1: i32) -> (i32, i32) {
    %c0_i32 = arith.constant 0 : i32
    %c0_i32_0 = arith.constant 0 : i32
    %c0_i32_1 = arith.constant 0 : i32
    return %c0_i32, %c0_i32_0 : i32, i32
  }
  func.func @transform_10(%arg0: i32, %arg1: i32) -> (i32, i32) {
    %c0_i32 = arith.constant 0 : i32
    %c0_i32_0 = arith.constant 0 : i32
    %c0_i32_1 = arith.constant 0 : i32
    return %c0_i32, %c0_i32_0 : i32, i32
  }
  func.func @transform_11(%arg0: i32, %arg1: i32) -> (i32, i32) {
    %c0_i32 = arith.constant 0 : i32
    %c0_i32_0 = arith.constant 0 : i32
    %c0_i32_1 = arith.constant 0 : i32
    return %c0_i32, %c0_i32_0 : i32, i32
  }
  func.func @transform_12(%arg0: i32, %arg1: i32) -> (i32, i32, i32) {
    %c0_i32 = arith.constant 0 : i32
    %c0_i32_0 = arith.constant 0 : i32
    return %arg0, %arg1, %c0_i32 : i32, i32, i32
  }
}

</mosaic_0001>

<bundles_post_ra>
// kernel: tpu_custom_call.1
= control target key start
LH: loop header
LB: loop body
LE: loop exit
PB: predicated region body
PF: predicated region fallthrough
CT: control target
= control target key end

     0   :  { %s3042_s0 = inlined_call_operand.hbm [shape: f32[2,8,32], index: 0, kind: input, shape index: {}]   ;;  %s3043_s1 = inlined_call_operand.hbm [shape: f32[2,8,32], index: 1, kind: input, shape index: {}]   ;;  %s3044_s2 = inlined_call_operand.hbm [shape: f32[2,8,32], index: 2, kind: input, shape index: {}]   ;;  %s3045_s3 = inlined_call_operand.hbm [shape: bf16[2,8,8], index: 3, kind: input, shape index: {}]   ;;  %s3046_s4 = inlined_call_operand.hbm [shape: f32[32,32], index: 4, kind: input, shape index: {}]   ;;  %s3047_s5 = inlined_call_operand.vmem [shape: f32[1,32], index: 5, kind: input, shape index: {}]   ;;  %s3048_s6 = inlined_call_operand.hbm [shape: f32[32,32], index: 6, kind: input, shape index: {}]   ;;  %s3049_s7 = inlined_call_operand.vmem [shape: f32[1,32], index: 7, kind: input, shape index: {}]   ;;  %s3050_s8 = inlined_call_operand.hbm [shape: f32[32,32], index: 8, kind: input, shape index: {}]   ;;  %s3051_s9 = inlined_call_operand.vmem [shape: f32[1,32], index: 9, kind: input, shape index: {}]   ;;  %s3052_s10 = inlined_call_operand.vmem [shape: f32[32,32], index: 10, kind: input, shape index: {}]   ;;  %s3053_s11 = inlined_call_operand.vmem [shape: f32[1,32], index: 11, kind: input, shape index: {}]   ;;  %s3054_s12 = inlined_call_operand.hbm [shape: f32[2,8,32], index: 12, kind: output, shape index: {}]  }
   0x1   :  { %3075 = sst [smem:[#allocation30_spill]] %s3043_s1 }
   0x2   :  { %3076 = sst [smem:[#allocation31_spill]] %s3046_s4 }
   0x3   :  { %3077 = sst [smem:[#allocation32_spill]] %s3047_s5 }
   0x4   :  { %3078 = sst [smem:[#allocation33_spill]] %s3048_s6 }
   0x5   :  { %3079 = sst [smem:[#allocation34_spill]] %s3051_s9 }
   0x6   :  { %3080 = sst [smem:[#allocation35_spill]] %s3052_s10 }
   0x7   :  { %3081 = sst [smem:[#allocation36_spill]] %s3053_s11 }
   0x8   :  { %3082 = sst [smem:[#allocation37_spill]] %s3054_s12 }
   0x9   :  { %17 = vsyncpa [#allocation5], 0 }
   0xa   :  { %19 = vsyncpa [#allocation5 + $0x1], 0 }
   0xb   :  { %20 = vsyncpa [#allocation8], 0 }
   0xc   :  { %22 = vsyncpa [#allocation8 + $0x1], 0 }
   0xd   :  { %23 = vsyncpa [#allocation11], 0 }
   0xe   :  { %25 = vsyncpa [#allocation11 + $0x1], 0 }
   0xf   :  { %26 = vsyncpa [#allocation14], 0 }
  0x10   :  { %27 = vsyncpa [#allocation6], 0 }
  0x11   :  { %29 = vsyncpa [#allocation6 + $0x1], 0  ;;  %s2531_s21 = smov 0   ;;  %s2533_s22 = smov 0  }
  0x12   :  { %s2535_s23 = smov 0   ;;  %s2537_s24 = smov 0  }
  0x13   :  { %s2539_s25 = smov 0   ;;  %s2541_s26 = smov 0  }
  0x14 LB: > { %3083 = sst [smem:[#allocation23_spill]] %s2425_s21  ;;  %s2562_s27 = sadd.s32 4294967295, %s2445_s26   ;;  %s2445_s26 = sphi %s2541_s26, %s35_s26   ;;  %s2441_s25 = sphi %s2539_s25, %s3134_s25   ;;  %s2437_s24 = sphi %s2537_s24, %s3133_s24   ;;  %s2433_s23 = sphi %s2535_s23, %s3129_s23   ;;  %s2429_s22 = sphi %s2533_s22, %s3132_s22   ;;  %s2425_s21 = sphi %s2531_s21, %s3131_s21  }
  0x15   : > { %3084 = sst [smem:[#allocation24_spill]] %s2433_s23  ;;  %s1817_s28 = sadd.s32 4294967294, %s2445_s26  }
  0x16   : > { %3085 = sst [smem:[#allocation25_spill]] %s2437_s24  ;;  %p69_p0 = scmp.ne.s32.totalorder %s2429_s22, %s2425_s21 }
  0x17   : > { %p3058_p1 = scmp.eq.s32.totalorder %s2562_s27, 0  ;;  %p349_p3 = scmp.eq.s32.totalorder %s1817_s28, 1 }
  0x18   : > { %p1818_p5 = scmp.ge.s32.totalorder %s2445_s26, 1  ;;  %p356_p7 = scmp.lt.s32.totalorder %s2445_s26, 3 }
  0x19   : > { %p2571_p4 = por %p3058_p1, %p69_p0  ;;  %p2576_p6 = por %p349_p3, %p69_p0 }
  0x1a   : > { %p2581_p8 = pnand %p1818_p5, %p356_p7  ;;  %s2447_s14 = smov [#allocation12]  }
  0x1b   : > { %s3086_s29 = scalar_select %p2571_p4, 1, 0 }
  0x1c   : > { %s3087_s30 = scalar_select %p2576_p6, 1, 0 }
  0x1d   : > { %s3089_s13 = scalar_select %p2581_p8, 1, 0 }
  0x1e   : > { %3088 = sst [smem:[#allocation26_spill]] %s3087_s30  ;;  %s368_s15 = sshll.u32 %s2447_s14, 4  ;;  %s2585_s15 = int_to_ptr.vmem [resolvable:$true] %s368_s15 }
  0x1f   : > { %p2030_p9 = pneg %p2581_p8  ;;  %s2448_s17 = smov [#allocation13]  }
  0x20   : > { %s384_s18 = sshll.u32 %s2448_s17, 4  ;;  %s3091_s4 = sld [smem:[#allocation31_spill]]  ;;  %s2596_s18 = int_to_ptr.vmem [resolvable:$true] %s384_s18 }
  0x21   : > { %p2592_p11 = pnand %p2030_p9, %p3058_p1 }
  0x23   : > { %s3090_s16 = scalar_select %p2592_p11, 1, 0 }
  0x24   : > { %p2606_p13 = pneg %p2592_p11 }
  0x26   : > { %s2143_s28 = scalar_lea.hbm %s3091_s4, 512 }
  0x27   : > { %p2144_p12 = scmp.ne.s32.totalorder %s3091_s4, %s2143_s28  ;;  %p2150_p5 = scmp.lt.u32.totalorder %s2143_s28, %s3091_s4 }
  0x28   : > { %s3092_s21 = scalar_select %p2606_p13, 1, 0 }
  0x29   : > { %p2146_p0 = pnand %p2606_p13, %p2144_p12 }
  0x2b   : > { %p2147_p3 = pneg %p2146_p0 }
  0x2d   : > { %p2152_p7 = pnand %p2150_p5, %p2147_p3 }
  0x2f   : > { %2155 = shalt.err (!%p2152_p7)
}
  0x30   : > { %s2156_s30 = scalar_lea.vmem %s2585_s15, 512  ;;  %p2164_p2 = scmp.lt.s32.totalorder %s2585_s15, %s2585_s15 }
  0x31   : > { %p2157_p9 = scmp.ne.s32.totalorder %s2585_s15, %s2156_s30  ;;  %p2165_p6 = scmp.lt.s32.totalorder %s2156_s30, %s2156_s30 }
  0x33   : > { %p2159_p10 = pnand %p2157_p9, %p2606_p13  ;;  %p2166_p12 = por %p2165_p6, %p2164_p2 }
  0x35   : > { %p2160_p1 = pneg %p2159_p10 }
  0x37   : > { %p2167_p0 = pnand %p2166_p12, %p2160_p1 }
  0x39   : > { %2170 = shalt.err (!%p2167_p0)
}
  0x3a   : > { %s3060_s19 = smov 128   ;;  %s3061_s12 = smov 8  }
  0x3b   : > { %2033 = dma.hbm_to_vmem [thread:$0]  (!%p2592_p11), %s3091_s4, 512, %s2585_s15, [#allocation11], %s3060_s19, %s3060_s19, %s3061_s12  }
  0x3c   : > { %s3093_s6 = sld [smem:[#allocation33_spill]] }
  0x42   : > { %s2171_s30 = scalar_lea.hbm %s3093_s6, 512 }
  0x43   : > { %p2172_p1 = scmp.ne.s32.totalorder %s3093_s6, %s2171_s30  ;;  %p2178_p10 = scmp.lt.u32.totalorder %s2171_s30, %s3093_s6 }
  0x45   : > { %p2174_p2 = pnand %p2172_p1, %p2606_p13 }
  0x47   : > { %p2175_p6 = pneg %p2174_p2 }
  0x49   : > { %p2180_p3 = pnand %p2178_p10, %p2175_p6 }
  0x4b   : > { %2183 = shalt.err (!%p2180_p3)
}
  0x4c   : > { %s2184_s15 = scalar_lea.vmem %s2596_s18, 512  ;;  %p2192_p12 = scmp.lt.s32.totalorder %s2596_s18, %s2596_s18 }
  0x4d   : > { %p2185_p5 = scmp.ne.s32.totalorder %s2596_s18, %s2184_s15  ;;  %p2193_p0 = scmp.lt.s32.totalorder %s2184_s15, %s2184_s15 }
  0x4f   : > { %p2187_p7 = pnand %p2185_p5, %p2606_p13  ;;  %p2194_p1 = por %p2193_p0, %p2192_p12 }
  0x51   : > { %p2188_p9 = pneg %p2187_p7 }
  0x53   : > { %p2195_p2 = pnand %p2194_p1, %p2188_p9 }
  0x55   : > { %2198 = shalt.err (!%p2195_p2)
}
  0x56   : > { %2036 = dma.hbm_to_vmem [thread:$0]  (!%p2592_p11), %s3093_s6, 512, %s2596_s18, [#allocation14], %s3060_s19, %s3060_s19, %s3061_s12  }
  0x57   : > { %s47_s11 = sadd.s32 1, %s2441_s25  ;;  %s56_s24 = sadd.s32 1, %s2433_s23 }
  0x58   : > { %p49_p6 = scmp.ge.s32.totalorder %s47_s11, 2  ;;  %p63_p10 = scmp.ne.s32.totalorder %s2433_s23, %s2429_s22 }
  0x59   : > { %p64_p3 = scmp.eq.s32.totalorder %s2445_s26, 0  ;;  %p2060_p5 = scmp.lt.s32.totalorder %s2445_s26, 2 }
  0x5a   : > { %s3136_s11 = smov (%p49_p6, %s47_s11), 0  ;;  %p3095_p9 = scmp.eq.s32.totalorder %s2562_s27, 1 }
  0x5b   : > { %3094 = sst [smem:[#allocation27_spill]] %s3136_s11  ;;  %p65_p7 = por %p64_p3, %p63_p10 }
  0x5c   : > { %p2666_p12 = por %p3095_p9, %p63_p10  ;;  %s51_s28 = ssub.s32 %s2441_s25, %s3136_s11 }
  0x5d   : > { %s2673_s18 = sand.u32 1, %s2433_s23   ;;  %p54_p0 = scmp.eq.s32.totalorder %s51_s28, 0 }
  0x5e   : > { %s3096_s20 = scalar_select %p2666_p12, 1, 0 }
  0x5f   : > { %s2676_s14 = sshll.u32 %s2673_s18, 3  ;;  %s2679_s17 = sshll.u32 %s2441_s25, 7 }
  0x60   : > { %3097 = sst [smem:[#allocation28_spill]] %s3096_s20  ;;  %p2681_p1 = pnand %p2060_p5, %p65_p7 }
  0x61   : > { %s2686_s15 = scalar_select %p54_p0, %s2433_s23, %s56_s24  }
  0x62   : > { %s3098_s30 = scalar_select %p2681_p1, 1, 0 }
  0x63   : > { %3099 = sst [smem:[#allocation29_spill]] %s2686_s15  ;;  %s3066_s9 = sand.u32 1, %s2445_s26  }
  0x64   : > { %s3100_s1 = sld [smem:[#allocation30_spill]]  ;;  %s446_s28 = scalar_lea.vmem [#allocation7], %s2676_s14 }
  0x65   : > { %s453_s4 = sshll.u32 %s446_s28, 4  ;;  %s2700_s6 = scalar_lea.sflag [#allocation8], %s3066_s9  ;;  %s2696_s4 = int_to_ptr.vmem [resolvable:$true] %s453_s4 }
  0x66   : > { %p2706_p6 = pneg %p2681_p1 }
  0x6a   : > { %s2693_s12 = scalar_lea.hbm %s3100_s1, %s2679_s17  ;;  %s2204_s28 = scalar_lea.hbm %s3100_s1, 256 }
  0x6b   : > { %s2199_s11 = scalar_lea.hbm %s2693_s12, 128  ;;  %p2205_p5 = scmp.lt.u32.totalorder %s2693_s12, %s3100_s1 }
  0x6c   : > { %p2200_p2 = scmp.ne.s32.totalorder %s2693_s12, %s2199_s11  ;;  %p2206_p7 = scmp.lt.u32.totalorder %s2204_s28, %s2199_s11 }
  0x6d   : > { %p2208_p0 = scmp.lt.u32.totalorder %s2199_s11, %s2693_s12 }
  0x6e   : > { %p2202_p10 = pnand %p2706_p6, %p2200_p2  ;;  %p2207_p9 = por %p2206_p7, %p2205_p5 }
  0x70   : > { %p2203_p3 = pneg %p2202_p10  ;;  %p2209_p12 = por %p2208_p0, %p2207_p9 }
  0x72   : > { %p2210_p4 = pnand %p2209_p12, %p2203_p3 }
  0x74   : > { %2213 = shalt.err (!%p2210_p4)
}
  0x75   : > { %s2214_s9 = scalar_lea.vmem %s2696_s4, 128  ;;  %s2451_s19 = smov [#allocation7]  }
  0x76   : > { %p2215_p2 = scmp.ne.s32.totalorder %s2696_s4, %s2214_s9  ;;  %s2219_s10 = sshll.u32 %s2451_s19, 4  ;;  %s2220_s10 = int_to_ptr.vmem [resolvable:$false] %s2219_s10 }
  0x77   : > { %s2221_s23 = scalar_lea.vmem %s2220_s10, 256  ;;  %p2222_p11 = scmp.lt.s32.totalorder %s2696_s4, %s2220_s10 }
  0x78   : > { %p2217_p10 = pnand %p2215_p2, %p2706_p6  ;;  %p2223_p13 = scmp.lt.s32.totalorder %s2221_s23, %s2214_s9 }
  0x7a   : > { %p2218_p8 = pneg %p2217_p10  ;;  %p2224_p5 = por %p2223_p13, %p2222_p11 }
  0x7c   : > { %p2225_p7 = pnand %p2224_p5, %p2218_p8 }
  0x7e   : > { %2228 = shalt.err (!%p2225_p7)
}
  0x7f   : > { %2046 = dma.hbm_to_vmem [thread:$0]  (!%p2681_p1), %s2693_s12, 128, %s2696_s4, %s2700_s6  }
  0x80   : > { %s2452_s11 = smov [#allocation15]   ;;  %s2734_s1 = scalar_lea.hbm %s3042_s0, %s2679_s17 }
  0x81   : > { %s400_s15 = sshll.u32 %s2452_s11, 4  ;;  %s2229_s23 = scalar_lea.hbm %s3050_s8, 512  ;;  %s401_s15 = int_to_ptr.vmem [resolvable:$true] %s400_s15 }
  0x82   : > { %p2230_p4 = scmp.ne.s32.totalorder %s3050_s8, %s2229_s23  ;;  %p3102_p8 = scmp.ne.s32.totalorder %s3092_s21, 0 }
  0x83   : > { %p2236_p12 = scmp.lt.u32.totalorder %s2229_s23, %s3050_s8 }
  0x84   : > { %p2232_p11 = pnand %p2230_p4, %p3102_p8 }
  0x86   : > { %p2233_p13 = pneg %p2232_p11 }
  0x88   : > { %p2238_p3 = pnand %p2236_p12, %p2233_p13 }
  0x8a   : > { %2241 = shalt.err (!%p2238_p3)
}
  0x8b   : > { %s2242_s11 = scalar_lea.vmem %s401_s15, 512  ;;  %p2250_p10 = scmp.lt.s32.totalorder %s401_s15, %s401_s15 }
  0x8c   : > { %p2243_p9 = scmp.ne.s32.totalorder %s401_s15, %s2242_s11  ;;  %p2251_p5 = scmp.lt.s32.totalorder %s2242_s11, %s2242_s11 }
  0x8e   : > { %p2245_p0 = pnand %p2243_p9, %p3102_p8  ;;  %p2252_p7 = por %p2251_p5, %p2250_p10 }
  0x90   : > { %p2246_p2 = pneg %p2245_p0 }
  0x92   : > { %p2253_p1 = pnand %p2252_p7, %p2246_p2 }
  0x94   : > { %2256 = shalt.err (!%p2253_p1)
}
  0x95   : > { %p3103_p4 = scmp.ne.s32.totalorder %s3090_s16, 0  ;;  %s3104_s5 = smov 8  }
  0x96   : > { %s3105_s20 = smov 128   ;;  %s427_s21 = scalar_lea.vmem [#allocation4], %s2676_s14 }
  0x97   : > { %2039 = dma.hbm_to_vmem [thread:$0]  (!%p3103_p4), %s3050_s8, 512, %s401_s15, [#allocation14], %s3105_s20, %s3105_s20, %s3104_s5  }
  0x98   : > { %s435_s9 = sshll.u32 %s427_s21, 4  ;;  %s2764_s23 = scalar_lea.hbm %s3044_s2, %s2679_s17  ;;  %s2758_s9 = int_to_ptr.vmem [resolvable:$true] %s435_s9 }
  0x99   : > { %s424_s4 = scalar_lea.sflag [#allocation5], %s2673_s18  ;;  %s2257_s12 = scalar_lea.hbm %s2734_s1, 128 }
  0x9a   : > { %p2258_p1 = scmp.ne.s32.totalorder %s2734_s1, %s2257_s12  ;;  %s2262_s19 = scalar_lea.hbm %s3042_s0, 256 }
  0x9b   : > { %p2263_p13 = scmp.lt.u32.totalorder %s2734_s1, %s3042_s0  ;;  %p2264_p12 = scmp.lt.u32.totalorder %s2262_s19, %s2257_s12 }
  0x9c   : > { %p2260_p8 = pnand %p2258_p1, %p2706_p6  ;;  %p2266_p9 = scmp.lt.u32.totalorder %s2257_s12, %s2734_s1 }
  0x9d   : > { %p2265_p3 = por %p2264_p12, %p2263_p13 }
  0x9e   : > { %p2261_p11 = pneg %p2260_p8 }
  0x9f   : > { %p2267_p0 = por %p2266_p9, %p2265_p3 }
  0xa1   : > { %p2268_p2 = pnand %p2267_p0, %p2261_p11 }
  0xa3   : > { %2271 = shalt.err (!%p2268_p2)
}
  0xa4   : > { %s2272_s17 = scalar_lea.vmem %s2758_s9, 128  ;;  %s2453_s20 = smov [#allocation4]  }
  0xa5   : > { %p2273_p10 = scmp.ne.s32.totalorder %s2758_s9, %s2272_s17  ;;  %s2277_s21 = sshll.u32 %s2453_s20, 4  ;;  %s2278_s21 = int_to_ptr.vmem [resolvable:$false] %s2277_s21 }
  0xa6   : > { %s2279_s16 = scalar_lea.vmem %s2278_s21, 256  ;;  %p2280_p4 = scmp.lt.s32.totalorder %s2758_s9, %s2278_s21 }
  0xa7   : > { %p2275_p5 = pnand %p2273_p10, %p2706_p6  ;;  %p2281_p1 = scmp.lt.s32.totalorder %s2279_s16, %s2272_s17 }
  0xa9   : > { %p2276_p7 = pneg %p2275_p5  ;;  %p2282_p8 = por %p2281_p1, %p2280_p4 }
  0xab   : > { %p2283_p13 = pnand %p2282_p8, %p2276_p7 }
  0xad   : > { %2286 = shalt.err (!%p2283_p13)
}
  0xae   : > { %p3106_p11 = scmp.ne.s32.totalorder %s3098_s30, 0  ;;  %s464_s10 = scalar_lea.vmem [#allocation9], %s2676_s14 }
  0xaf   : > { %s471_s12 = sshll.u32 %s464_s10, 4  ;;  %s1829_s11 = sshll.u32 %s2673_s18, 2  ;;  %s472_s12 = int_to_ptr.vmem [resolvable:$true] %s471_s12 }
  0xb0   : > { %2043 = dma.hbm_to_vmem [thread:$0]  (!%p3106_p11), %s2734_s1, 128, %s2758_s9, %s424_s4  }
  0xb1   : > { %s2287_s28 = scalar_lea.hbm %s2764_s23, 128  ;;  %s2292_s5 = scalar_lea.hbm %s3044_s2, 256 }
  0xb2   : > { %p2288_p12 = scmp.ne.s32.totalorder %s2764_s23, %s2287_s28  ;;  %p2293_p0 = scmp.lt.u32.totalorder %s2764_s23, %s3044_s2 }
  0xb3   : > { %p2294_p2 = scmp.lt.u32.totalorder %s2292_s5, %s2287_s28  ;;  %p2296_p5 = scmp.lt.u32.totalorder %s2287_s28, %s2764_s23 }
  0xb4   : > { %p2290_p3 = pnand %p2288_p12, %p2706_p6 }
  0xb5   : > { %p2295_p10 = por %p2294_p2, %p2293_p0 }
  0xb6   : > { %p2291_p9 = pneg %p2290_p3 }
  0xb7   : > { %p2297_p7 = por %p2296_p5, %p2295_p10 }
  0xb9   : > { %p2298_p4 = pnand %p2297_p7, %p2291_p9 }
  0xbb   : > { %2301 = shalt.err (!%p2298_p4)
}
  0xbc   : > { %s2302_s1 = scalar_lea.vmem %s472_s12, 128  ;;  %s2454_s14 = smov [#allocation9]  }
  0xbd   : > { %p2303_p1 = scmp.ne.s32.totalorder %s472_s12, %s2302_s1  ;;  %s2307_s9 = sshll.u32 %s2454_s14, 4  ;;  %s2308_s9 = int_to_ptr.vmem [resolvable:$false] %s2307_s9 }
  0xbe   : > { %s2309_s4 = scalar_lea.vmem %s2308_s9, 256  ;;  %p2310_p12 = scmp.lt.s32.totalorder %s472_s12, %s2308_s9 }
  0xbf   : > { %p2305_p8 = pnand %p2303_p1, %p2706_p6  ;;  %p2311_p3 = scmp.lt.s32.totalorder %s2309_s4, %s2302_s1 }
  0xc1   : > { %p2306_p13 = pneg %p2305_p8  ;;  %p2312_p11 = por %p2311_p3, %p2310_p12 }
  0xc3   : > { %p2313_p0 = pnand %p2312_p11, %p2306_p13 }
  0xc5   : > { %2316 = shalt.err (!%p2313_p0)
}
  0xc6   : > { %p3107_p2 = scmp.ne.s32.totalorder %s3098_s30, 0  ;;  %s1830_s21 = sshll.u32 %s2441_s25, 6 }
  0xc7   : > { %s482_s16 = scalar_lea.vmem [#allocation10], %s1829_s11  ;;  %s2814_s15 = scalar_lea.hbm %s3045_s3, %s1830_s21 }
  0xc8   : > { %2049 = dma.hbm_to_vmem [thread:$0]  (!%p3107_p2), %s2764_s23, 128, %s472_s12, %s2700_s6  }
  0xc9   : > { %s490_s10 = sshll.u32 %s482_s16, 4  ;;  %s3108_s5 = sand.u32 1, %s2445_s26   ;;  %s491_s10 = int_to_ptr.vmem [resolvable:$true] %s490_s10 }
  0xca   : > { %s479_s17 = scalar_lea.sflag [#allocation11], %s3108_s5  ;;  %s2317_s20 = scalar_lea.hbm %s2814_s15, 64 }
  0xcb   : > { %p2318_p11 = scmp.ne.s32.totalorder %s2814_s15, %s2317_s20  ;;  %s2322_s23 = scalar_lea.hbm %s3045_s3, 128 }
  0xcc   : > { %p2323_p5 = scmp.lt.u32.totalorder %s2814_s15, %s3045_s3  ;;  %p2324_p7 = scmp.lt.u32.totalorder %s2322_s23, %s2317_s20 }
  0xcd   : > { %p2320_p9 = pnand %p2318_p11, %p2706_p6  ;;  %p2326_p1 = scmp.lt.u32.totalorder %s2317_s20, %s2814_s15 }
  0xce   : > { %p2325_p4 = por %p2324_p7, %p2323_p5 }
  0xcf   : > { %p2321_p10 = pneg %p2320_p9 }
  0xd0   : > { %p2327_p8 = por %p2326_p1, %p2325_p4 }
  0xd2   : > { %p2328_p13 = pnand %p2327_p8, %p2321_p10 }
  0xd4   : > { %2331 = shalt.err (!%p2328_p13)
}
  0xd5   : > { %s2332_s1 = scalar_lea.vmem %s491_s10, 64  ;;  %s2455_s14 = smov [#allocation10]  }
  0xd6   : > { %p2333_p12 = scmp.ne.s32.totalorder %s491_s10, %s2332_s1  ;;  %s2337_s9 = sshll.u32 %s2455_s14, 4  ;;  %s2338_s9 = int_to_ptr.vmem [resolvable:$false] %s2337_s9 }
  0xd7   : > { %s2339_s4 = scalar_lea.vmem %s2338_s9, 128  ;;  %p2340_p11 = scmp.lt.s32.totalorder %s491_s10, %s2338_s9 }
  0xd8   : > { %p2335_p3 = pnand %p2333_p12, %p2706_p6  ;;  %p2341_p9 = scmp.lt.s32.totalorder %s2339_s4, %s2332_s1 }
  0xda   : > { %p2336_p0 = pneg %p2335_p3  ;;  %p2342_p2 = por %p2341_p9, %p2340_p11 }
  0xdc   : > { %p2343_p5 = pnand %p2342_p2, %p2336_p0 }
  0xde   : > { %2346 = shalt.err (!%p2343_p5)
}
  0xdf   : > { %p3109_p7 = scmp.ne.s32.totalorder %s3098_s30, 0  ;;  %p3110_p10 = scmp.ne.s32.totalorder %s3089_s13, 0 }
  0xe0   : > { %s2838_s24 = sand.u32 (!%p3110_p10), 1, %s2429_s22   ;;  %p3111_p6 = scmp.ne.s32.totalorder (!%p3110_p10), %s3086_s29, 0 }
  0xe1   : > { %2052 = dma.hbm_to_vmem [thread:$0]  (!%p3109_p7), %s2814_s15, 64, %s491_s10, %s479_s17  }
  0xe2   : > { %499 = sbr.rel (%p3110_p10) target bundleno = 2162 (0x872), region = 68  ;;  %s2841_s21 = sshll.u32 (!%p3110_p10), %s2838_s24, 3 }
  0xe3   : > { %s502_s16 = scalar_lea.sflag (!%p3110_p10), [#allocation5], %s2838_s24  ;;  %s505_s28 = scalar_lea.vmem (!%p3110_p10), [#allocation4], %s2841_s21 }
  0xe9   : > { %2400 = dma.done.wait (%p3111_p6), %s502_s16, 128  }
  0xea   : > { %2402 = vsyncadd (%p3111_p6), %s502_s16, 4294967168  ;;  %s510_s13 = sand.u32 1, %s2562_s27   ;;  %s514_s10 = scalar_lea.vmem [#allocation7], %s2841_s21 }
  0xeb   : > { %s511_s30 = scalar_lea.sflag [#allocation8], %s510_s13 }
  0xec   : > { %2404 = dma.done.wait (%p3111_p6), %s511_s30, 256  }
  0xed   : > { %2406 = vsyncadd (%p3111_p6), %s511_s30, 4294967040  ;;  %s1835_s19 = sshll.u32 %s2838_s24, 2  ;;  %s523_s15 = scalar_lea.vmem [#allocation9], %s2841_s21 }
  0xee   : > { %s529_s5 = scalar_lea.sflag [#allocation11], %s510_s13  ;;  %s2857_s17 = scalar_lea.vmem [#allocation10], %s1835_s19 }
  0xef   : > { %2408 = dma.done.wait (%p3111_p6), %s529_s5, 64  }
  0xf0   : > { %2410 = vsyncadd (%p3111_p6), %s529_s5, 4294967232  ;;  %p3112_p2 = scmp.eq.s32.totalorder %s2562_s27, 0 }
  0xf2   : > { %2412 = dma.done.wait (%p3112_p2), [#allocation11], 512   ;;  %p3113_p4 = pmov %p3112_p2 }
  0xf3   : > { %p3114_p1 = pmov %p3112_p2 }
  0xf4   : > { %2414 = vsyncadd (%p3113_p4), [#allocation11], 4294966784 }
  0xf5   : > { %2416 = dma.done.wait (%p3114_p1), [#allocation14], 1024   ;;  %p3115_p8 = pmov %p3114_p1 }
  0xf6   : > { %v2456_v0 = vmov 0.0|0.0   ;;  %vm2457_vm0 = vmmov 0   ;;  %v2458_v1 = vmov 0.0   ;;  %v606_v2 = vld [vmem:[#allocation13] sm:$0xff]  ;;  %v607_v3 = vld [vmem:[#allocation13 + $0x8] sm:$0xff]  ;;  %v608_v4 = vld [vmem:[#allocation13 + $0x10] sm:$0xff] }
  0xf7   : > { %2418 = vsyncadd (%p3115_p8), [#allocation14], 4294966272  ;;  %1984 = vmatprep.subr.bf16.mxu0 %v2456_v0  ;;  %1908 = vmatprep.mubr.msk.f32.mxu0 %vm2457_vm0, %v2458_v1  ;;  %v1985_v5 = vpack.c.bf16 %v607_v3, %v606_v2  ;;  %v609_v6 = vld [vmem:[#allocation13 + $0x18] sm:$0xff]  ;;  %v691_v8 = vld [vmem:[#allocation15] sm:$0xff]  ;;  %vm617_vm1 = vcmask 261120   ;;  %s3116_s18 = sld [smem:[#allocation32_spill]] }
  0xf8   : > { %1990 = vmatprep.subr.bf16.mxu1 %v2456_v0  ;;  %1919 = vmatprep.mubr.msk.f32.mxu1 %vm2457_vm0, %v2458_v1  ;;  %v1988_v7 = vpack.c.bf16 %v609_v6, %v608_v4  ;;  %v692_v9 = vld [vmem:[#allocation15 + $0x8] sm:$0xff]  ;;  %v778_v10 = vld [vmem:[#allocation12] sm:$0xff]  ;;  %v780_v15 = vld [vmem:[#allocation12 + $0x10] sm:$0xff]  ;;  %vm867_vm2 = vcmask 64512   ;;  %s2459_s23 = smov 120   ;;  %s2460_s12 = smov 112  }
  0xf9   : > { %1986 = vmatpush3.bf16.msra.mxu0 %v1985_v5  ;;  %v779_v11 = vld [vmem:[#allocation12 + $0x8] sm:$0xff]  ;;  %v1991_v12 = vpack.c.bf16 %v692_v9, %v691_v8  ;;  %v604_v13 = vld [vmem:[%s514_s10] sm:$0xff]  ;;  %v693_v19 = vld [vmem:[#allocation15 + $0x10] sm:$0xff]  ;;  %s2461_s11 = smov 104   ;;  %s3117_s9 = sld [smem:[#allocation34_spill]]  ;;  %vm1537_vm3 = vcmask 130048  }
  0xfa   : > { %1987 = vmatprep.subr.bf16.mxu0 %v2456_v0  ;;  %v1997_v14 = vpack.c.bf16 %v779_v11, %v778_v10  ;;  %v781_v16 = vld [vmem:[#allocation12 + $0x18] sm:$0xff]  ;;  %v777_v18 = vld [vmem:[%s505_s28] sm:$0xff]  ;;  %s3118_s28 = sld [smem:[#allocation35_spill]]  ;;  %s2463_s27 = smov 16   ;;  %vm1539_vm4 = vcmask 195584  }
  0xfb   : > { %1992 = vmatpush3.bf16.msra.mxu1 %v1991_v12  ;;  %v2000_v17 = vpack.c.bf16 %v781_v16, %v780_v15  ;;  %v694_v20 = vld [vmem:[#allocation15 + $0x18] sm:$0xff]  ;;  %v605_v22 = vld [vmem:[%s523_s15] sm:$0xff]  ;;  %s3119_s29 = sld [smem:[#allocation25_spill]]  ;;  %s2464_s20 = smov 24  }
  0xfc   : > { %1993 = vmatprep.subr.bf16.mxu1 %v2456_v0  ;;  %v1994_v21 = vpack.c.bf16 %v694_v20, %v693_v19  ;;  %v1840_v23 = vld [vmem:[%s3049_s7] ss:$0 sm:$0xff]  ;;  %s3120_s6 = sld [smem:[#allocation28_spill]]  ;;  %s599_s1 = scalar_lea.vmem [#allocation16], %s2841_s21 }
  0xfd   : > { %1989 = vmatpush3.bf16.msra.mxu0 %v1988_v7  ;;  %v1844_v27 = vld [vmem:[%s3116_s18] ss:$0 sm:$0xff]  ;;  %s1641_s14 = sshll.u32 %s599_s1, 4  ;;  %s3122_s16 = sld [smem:[#allocation37_spill]]  ;;  %s2994_s14 = int_to_ptr.vmem [resolvable:$true] %s1641_s14 }
  0xfe   : > { %1996 = vmatprep.subr.bf16.mxu0 %v2456_v0  ;;  %v863_v37 = vld [vmem:[%s2857_s17] sm:$0xf]  ;;  %s2462_s17 = smov 8   ;;  %s1627_s30 = scalar_lea.sflag [#allocation6], %s2838_s24 }
  0xff   : > { %1995 = vmatpush3.bf16.msra.mxu1 %v1994_v21  ;;  %v1842_v32 = vld [vmem:[%s3117_s9] ss:$0 sm:$0xff]  ;;  %v864_v38 = vunpack.c.l.bf16 %v863_v37  ;;  %s2347_s10 = scalar_lea.vmem %s2994_s14, 128  ;;  %s2465_s21 = smov [#allocation16]  }
 0x100   : > { %1909 = vmatmul.mubr.msk.f32.vlgmr.msra.gmra.mrb[0].mxu0 %vm617_vm1, %v604_v13  ;;  %1933 = vmatprep.subr.mxu1 %v2458_v1  ;;  %v1542_v37 = vld [vmem:[%s3118_s28 + $0x8] sm:$0xff]  ;;  %p2348_p13 = scmp.ne.s32.totalorder %s2994_s14, %s2347_s10  ;;  %s2351_s19 = sshll.u32 %s2465_s21, 4  ;;  %s2352_s19 = int_to_ptr.vmem [resolvable:$false] %s2351_s19 }
 0x101   : > { %1998 = vmatpush3.bf16.msra.mxu0 %v1997_v14  ;;  %1930 = vmatprep.mubr.msk.f32.mxu0 %vm2457_vm0, %v2458_v1  ;;  %s2353_s15 = scalar_lea.vmem %s2352_s19, 256  ;;  %p2354_p11 = scmp.lt.s32.totalorder %s2994_s14, %s2352_s19 }
 0x102   : > { %1999 = vmatprep.subr.bf16.mxu0 %v2456_v0  ;;  %1920 = vmatmul.mubr.msk.f32.vlgmr.msra.gmra.mrb[0].mxu1 %vm617_vm1, %v605_v22  ;;  %p3123_p12 = scmp.ne.s32.totalorder %s3120_s6, 0  ;;  %p2355_p9 = scmp.lt.s32.totalorder %s2353_s15, %s2347_s10 }
 0x103   : > { %1935 = vmatprep.mubr.msk.f32.mxu1 %vm2457_vm0, %v2458_v1 }
 0x104   : > { %p2349_p3 = pnand %p2348_p13, %p3123_p12  ;;  %p2356_p5 = por %p2355_p9, %p2354_p11 }
 0x105   : > { %2001 = vmatpush3.bf16.msra.mxu0 %v2000_v17 }
 0x106   : > { %1953 = vmatprep.subr.mxu0 %v2458_v1  ;;  %p2350_p0 = pneg %p2349_p3 }
 0x108   : > { %1931 = vmatmul.mubr.msk.f32.vlgmr.msra.gmra.mrb[2].mxu0 %vm617_vm1, %v777_v18  ;;  %p2357_p7 = pnand %p2356_p5, %p2350_p0 }
 0x109   : > { %1955 = vmatprep.mubr.msk.f32.mxu0 %vm2457_vm0, %v2458_v1 }
 0x1d3   : > { %v687_v24 = vpop.f32.mrb[0].mxu0 }
 0x1d4   : > { %v688_v25 = vadd.f32 %v1840_v23, %v687_v24  ;;  %v1910_v26 = vpop.f32.mrb[1].mxu0 }
 0x1d5   : > { %v771_v33 = vpop.f32.mrb[0].mxu1 }
 0x1d6   : > { %775 = vst.msk [vmem:[#allocation2] sm:$0xff] %vm617_vm1, %v688_v25  ;;  %v772_v34 = vadd.f32 %v1842_v32, %v771_v33  ;;  %v1921_v35 = vpop.f32.mrb[1].mxu1 }
 0x1d8   : > { %776 = vst.msk [vmem:[#allocation3] sm:$0xff] %vm617_vm1, %v772_v34 }
 0x1db   : > { %v859_v28 = vpop.f32.mrb[2].mxu0 }
 0x1dc   : > { %v1932_v29 = vpop.f32.mrb[3].mxu0  ;;  %v860_v31 = vadd.f32 %v1844_v27, %v859_v28 }
 0x1dd   : > { %v865_v30 = vld [vmem:[#allocation2] sm:$0xff] }
 0x1de   : > { %1030 = vrot.lane.b32.xlu1 %v865_v30, %s2459_s23  ;;  %1934 = vmatpush3.xpose.msk.msra.mxu1 %vm867_vm2, %v865_v30 }
 0x1df   : > { %1938 = vmatprep.subr.mxu1 %v2458_v1  ;;  %v2919_v36 = vld [vmem:[#allocation3] sm:$0xff] }
 0x1e1   : > { %1936 = vmatmul.mubr.msk.f32.vlgmr.msra.gmra.mrb[2].mxu1 %vm867_vm2, %v860_v31 }
 0x1e2   : > { %1028 = vrot.lane.b32.xlu1 %v860_v31, %s2459_s23  ;;  %1940 = vmatprep.mubr.msk.f32.mxu1 %vm2457_vm0, %v2458_v1 }
 0x1e3   : > { %1939 = vmatpush3.msra.mxu1 %v2919_v36 }
 0x1e4   : > { %1943 = vmatprep.subr.mxu1 %v2458_v1 }
 0x1e6   : > { %1194 = vrot.lane.b32.xlu1 %v860_v31, %s2460_s12 }
 0x1ea   : > { %1361 = vrot.lane.b32.xlu1 %v865_v30, %s2461_s11 }
 0x1ee   : > { %1359 = vrot.lane.b32.xlu1 %v860_v31, %s2461_s11 }
 0x250   : > { %v1031_v48 = vpop.permute.xlu1 %1030 }
 0x254   : > { %v1029_v49 = vpop.permute.xlu1 %1028 }
 0x258   : > { %v1195_v50 = vpop.permute.xlu1 %1194 }
 0x25c   : > { %v1362_v53 = vpop.permute.xlu1 %1361 }
 0x260   : > { %v1360_v55 = vpop.permute.xlu1 %1359 }
 0x2b4   : > { %v940_v39 = vpop.f32.mrb[2].mxu1 }
 0x2b5   : > { %v941_v40 = vadd.f32 %v940_v39, %v864_v38  ;;  %v1937_v41 = vpop.f32.mrb[3].mxu1  ;;  %v1543_v39 = vld [vmem:[%s3118_s28 + $0x10] sm:$0xff] }
 0x2b7   : > { %v944_v42 = vsel %vm867_vm2, %v941_v40, -inf }
 0x2b8   : > { %945 = vmax.xlane.f32.xlu0 %v944_v42 }
 0x345   : > { %v946_v43 = vpop.xlane.xlu0 %945 }
 0x346   : > { %v947_v44 = vsub.f32 %v941_v40, %v946_v43 }
 0x348   : > { %v948_v45 = vmul.f32 1.442695, %v947_v44 }
 0x34a   : > { %2127 = vpow2.f32 %v948_v45 }
 0x354   : > { %v2128_v46 = vpop.eup %2127 }
 0x355   : > { %v950_v47 = vsel %vm867_vm2, %v2128_v46, 0.0 }
 0x356   : > { %951 = vadd.xlane.f32.xlu0 %v950_v47 }
 0x36c   : > { %1196 = vrot.lane.b32.xlu0 %v865_v30, %s2460_s12 }
 0x3e3   : > { %v952_v51 = vpop.xlane.xlu0 %951 }
 0x3e4   : > { %2129 = vrcp.f32 %v952_v51 }
 0x3e7   : > { %v1197_v52 = vpop.permute.xlu0 %1196 }
 0x3e8   : > { %1954 = vmatpush3.xpose.msk.msra.mxu0 %vm867_vm2, %v1197_v52 }
 0x3e9   : > { %1963 = vmatprep.subr.mxu0 %v2458_v1 }
 0x3eb   : > { %1956 = vmatmul.mubr.msk.f32.vlgmr.msra.gmra.mrb[4].mxu0 %vm867_vm2, %v1195_v50 }
 0x3ec   : > { %1964 = vmatpush3.xpose.msk.msra.mxu0 %vm867_vm2, %v1362_v53  ;;  %1965 = vmatprep.mubr.msk.f32.mxu0 %vm2457_vm0, %v2458_v1 }
 0x3ed   : > { %2002 = vmatprep.subr.bf16.mxu0 %v2456_v0 }
 0x3ee   : > { %v2130_v54 = vpop.eup %2129 }
 0x3ef   : > { %v954_v56 = vmul.f32 %v2130_v54, %v2128_v46  ;;  %1966 = vmatmul.mubr.msk.f32.vlgmr.msra.gmra.mrb[6].mxu0 %vm867_vm2, %v1360_v55 }
 0x3f0   : > { %1981 = vmatprep.mubr.msk.f32.mxu0 %vm2457_vm0, %v2458_v1 }
 0x3f1   : > { %1941 = vmatmul.mubr.msk.f32.vlgmr.msra.gmra.mrb[4].mxu1 %vm867_vm2, %v954_v56 }
 0x3f2   : > { %1944 = vmatpush3.xpose.msk.msra.mxu1 %vm867_vm2, %v1031_v48  ;;  %1945 = vmatprep.mubr.msk.f32.mxu1 %vm2457_vm0, %v2458_v1 }
 0x3f3   : > { %1948 = vmatprep.subr.mxu1 %v2458_v1 }
 0x3f5   : > { %1946 = vmatmul.mubr.msk.f32.vlgmr.msra.gmra.mrb[6].mxu1 %vm867_vm2, %v1029_v49 }
 0x3f6   : > { %1950 = vmatprep.mubr.msk.f32.mxu1 %vm2457_vm0, %v2458_v1 }
 0x4be   : > { %v1268_v57 = vpop.f32.mrb[4].mxu0 }
 0x4bf   : > { %v1269_v58 = vadd.f32 %v1268_v57, %v864_v38  ;;  %v1957_v59 = vpop.f32.mrb[5].mxu0 }
 0x4c1   : > { %v1272_v60 = vsel %vm867_vm2, %v1269_v58, -inf }
 0x4c2   : > { %1273 = vmax.xlane.f32.xlu0 %v1272_v60  ;;  %v1433_v61 = vpop.f32.mrb[6].mxu0 }
 0x4c3   : > { %v1967_v62 = vpop.f32.mrb[7].mxu0  ;;  %v1434_v6 = vadd.f32 %v1433_v61, %v864_v38 }
 0x4c4   : > { %v2946_v63 = vpop.f32.mrb[4].mxu1 }
 0x4c5   : > { %v1942_v2 = vpop.f32.mrb[5].mxu1  ;;  %v1437_v8 = vsel %vm867_vm2, %v1434_v6, -inf }
 0x4c8   : > { %v1102_v3 = vpop.f32.mrb[6].mxu1 }
 0x4c9   : > { %v1103_v4 = vadd.f32 %v1102_v3, %v864_v38  ;;  %v1947_v5 = vpop.f32.mrb[7].mxu1 }
 0x4cb   : > { %v1106_v7 = vsel %vm867_vm2, %v1103_v4, -inf }
 0x4cc   : > { %1107 = vmax.xlane.f32.xlu1 %v1106_v7 }
 0x4d0   : > { %1438 = vmax.xlane.f32.xlu1 %v1437_v8 }
 0x54f   : > { %v1274_v9 = vpop.xlane.xlu0 %1273 }
 0x550   : > { %v1275_v10 = vsub.f32 %v1269_v58, %v1274_v9 }
 0x552   : > { %v1276_v11 = vmul.f32 1.442695, %v1275_v10 }
 0x554   : > { %2131 = vpow2.f32 %v1276_v11 }
 0x559   : > { %v1108_v12 = vpop.xlane.xlu1 %1107 }
 0x55a   : > { %v1109_v20 = vsub.f32 %v1103_v4, %v1108_v12 }
 0x55c   : > { %v1110_v21 = vmul.f32 1.442695, %v1109_v20 }
 0x55d   : > { %v1439_v13 = vpop.xlane.xlu1 %1438 }
 0x55e   : > { %v2132_v14 = vpop.eup %2131  ;;  %v1440_v15 = vsub.f32 %v1434_v6, %v1439_v13 }
 0x55f   : > { %v1278_v16 = vsel %vm867_vm2, %v2132_v14, 0.0 }
 0x560   : > { %v1441_v17 = vmul.f32 1.442695, %v1440_v15  ;;  %1279 = vadd.xlane.f32.xlu0 %v1278_v16 }
 0x562   : > { %2133 = vpow2.f32 %v1441_v17 }
 0x563   : > { %2135 = vpow2.f32 %v1110_v21 }
 0x56c   : > { %v2134_v18 = vpop.eup %2133 }
 0x56d   : > { %v1443_v19 = vsel %vm867_vm2, %v2134_v18, 0.0  ;;  %v2136_v22 = vpop.eup %2135 }
 0x56e   : > { %1444 = vadd.xlane.f32.xlu1 %v1443_v19  ;;  %v1112_v23 = vsel %vm867_vm2, %v2136_v22, 0.0 }
 0x576   : > { %1118 = vrot.lane.b32.xlu0 %v2919_v36, %s2459_s23 }
 0x57f   : > { %1283 = vrot.lane.b32.xlu1 %v2919_v36, %s2460_s12  ;;  %s3121_s12 = sld [smem:[#allocation36_spill]] }
 0x585   : > { %v1858_v52 = vld [vmem:[%s3121_s12] ss:$0 sm:$0xff] }
 0x5a3   : > { %1113 = vadd.xlane.f32.xlu1 %v1112_v23 }
 0x5b4   : > { %1448 = vrot.lane.b32.xlu1 %v2919_v36, %s2461_s11  ;;  %v1541_v36 = vld [vmem:[%s3118_s28] sm:$0xff]  ;;  %s1861_s11 = sshll.u32 %s3119_s29, 7 }
 0x5b5   : > { %v2003_v38 = vpack.c.bf16 %v1542_v37, %v1541_v36  ;;  %s2992_s13 = scalar_lea.hbm %s3122_s16, %s1861_s11 }
 0x5b7   : > { %2004 = vmatpush3.bf16.msra.mxu0 %v2003_v38 }
 0x5b8   : > { %2005 = vmatprep.subr.bf16.mxu0 %v2456_v0 }
 0x5ed   : > { %v1280_v24 = vpop.xlane.xlu0 %1279 }
 0x5f1   : > { %v1119_v25 = vpop.permute.xlu0 %1118 }
 0x5f2   : > { %1949 = vmatpush3.msra.mxu1 %v1119_v25 }
 0x5f3   : > { %1958 = vmatprep.subr.mxu1 %v2458_v1 }
 0x5fb   : > { %v1445_v26 = vpop.xlane.xlu1 %1444 }
 0x5ff   : > { %v1284_v27 = vpop.permute.xlu1 %1283 }
 0x630   : > { %v1114_v28 = vpop.xlane.xlu1 %1113 }
 0x631   : > { %2137 = vrcp.f32 %v1114_v28 }
 0x632   : > { %2139 = vrcp.f32 %v1280_v24 }
 0x633   : > { %2141 = vrcp.f32 %v1445_v26 }
 0x634   : > { %v1449_v34 = vpop.permute.xlu1 %1448 }
 0x63b   : > { %v2138_v29 = vpop.eup %2137 }
 0x63c   : > { %v1116_v30 = vmul.f32 %v2138_v29, %v2136_v22  ;;  %v2140_v31 = vpop.eup %2139 }
 0x63d   : > { %v1282_v32 = vmul.f32 %v2140_v31, %v2132_v14  ;;  %v2142_v33 = vpop.eup %2141 }
 0x63e   : > { %1951 = vmatmul.mubr.msk.f32.vlgmr.msra.gmra.mrb[8].mxu1 %vm867_vm2, %v1116_v30  ;;  %v1447_v35 = vmul.f32 %v2142_v33, %v2134_v18 }
 0x63f   : > { %1959 = vmatpush3.msra.mxu1 %v1284_v27  ;;  %1960 = vmatprep.mubr.msk.f32.mxu1 %vm2457_vm0, %v2458_v1 }
 0x640   : > { %1968 = vmatprep.subr.mxu1 %v2458_v1 }
 0x642   : > { %1961 = vmatmul.mubr.msk.f32.vlgmr.msra.gmra.mrb[10].mxu1 %vm867_vm2, %v1282_v32 }
 0x643   : > { %1969 = vmatpush3.msra.mxu1 %v1449_v34  ;;  %1970 = vmatprep.mubr.msk.f32.mxu1 %vm2457_vm0, %v2458_v1  ;;  %v1544_v1 = vld [vmem:[%s3118_s28 + $0x18] sm:$0xff] }
 0x644   : > { %v2006_v40 = vpack.c.bf16 %v1544_v1, %v1543_v39 }
 0x646   : > { %1971 = vmatmul.mubr.msk.f32.vlgmr.msra.gmra.mrb[12].mxu1 %vm867_vm2, %v1447_v35  ;;  %2007 = vmatpush3.bf16.msra.mxu0 %v2006_v40 }
 0x711   : > { %v1190_v41 = vpop.f32.mrb[8].mxu1 }
 0x712   : > { %1525 = vrot.lane.b32.xlu0 %v1190_v41, %s2462_s17  ;;  %v1952_v42 = vpop.f32.mrb[9].mxu1 }
 0x715   : > { %v1355_v43 = vpop.f32.mrb[10].mxu1 }
 0x716   : > { %1529 = vrot.lane.b32.xlu1 %v1355_v43, %s2463_s27  ;;  %v1962_v44 = vpop.f32.mrb[11].mxu1 }
 0x719   : > { %v1520_v0 = vpop.f32.mrb[12].mxu1 }
 0x71a   : > { %1533 = vrot.lane.b32.xlu0 %v1520_v0, %s2464_s20  ;;  %v1972_v45 = vpop.f32.mrb[13].mxu1 }
 0x784   : > { %v1526_v46 = vpop.permute.xlu0 %1525 }
 0x785   : > { %v1536_v48 = vsel %vm867_vm2, %v2946_v63, %v1526_v46 }
 0x788   : > { %v1530_v47 = vpop.permute.xlu1 %1529 }
 0x789   : > { %v1538_v49 = vsel %vm1537_vm3, %v1536_v48, %v1530_v47 }
 0x78c   : > { %v1534_v50 = vpop.permute.xlu0 %1533 }
 0x78d   : > { %v1540_v51 = vsel %vm1539_vm4, %v1538_v49, %v1534_v50 }
 0x78e   : > { %1982 = vmatmul.mubr.msk.f32.vlgmr.msra.gmra.mrb[8].mxu0 %vm617_vm1, %v1540_v51 }
 0x861   : > { %v1621_v53 = vpop.f32.mrb[8].mxu0 }
 0x862   : > { %v1622_v54 = vadd.f32 %v1858_v52, %v1621_v53  ;;  %v1983_v55 = vpop.f32.mrb[9].mxu0 }
 0x864   : > { %1625 = vst.msk [vmem:[%s599_s1] sm:$0xff] %vm617_vm1, %v1622_v54 }
 0x865   : > { %2360 = shalt.err (!%p2357_p7)
}
 0x866   : > { %s2361_s24 = scalar_lea.hbm %s2992_s13, 128  ;;  %s2365_s27 = scalar_lea.hbm %s3122_s16, 256 }
 0x867   : > { %p2362_p10 = scmp.ne.s32.totalorder %s2992_s13, %s2361_s24  ;;  %p2366_p4 = scmp.lt.u32.totalorder %s2992_s13, %s3122_s16 }
 0x868   : > { %p2367_p1 = scmp.lt.u32.totalorder %s2365_s27, %s2361_s24  ;;  %p2369_p13 = scmp.lt.u32.totalorder %s2361_s24, %s2992_s13 }
 0x869   : > { %p2363_p6 = pnand %p2362_p10, %p3123_p12 }
 0x86a   : > { %p2368_p8 = por %p2367_p1, %p2366_p4 }
 0x86b   : > { %p2364_p2 = pneg %p2363_p6 }
 0x86c   : > { %p2370_p3 = por %p2369_p13, %p2368_p8 }
 0x86e   : > { %p2371_p0 = pnand %p2370_p3, %p2364_p2 }
 0x870   : > { %2374 = shalt.err (!%p2371_p0)
}
 0x871   : > { %2028 = dma.vmem_to_hbm [thread:$0]  (%p3123_p12), %s2994_s14, 128, %s2992_s13, %s1627_s30  }
 0x872 PF: > { %s3124_s18 = sld [smem:[#allocation23_spill]]  ;;  %s3125_s23 = sld [smem:[#allocation26_spill]] }
 0x873   : > { %p3127_p9 = scmp.ge.s32.totalorder %s2445_s26, 2 }
 0x878   : > { %s1653_s12 = sand.u32 1, %s3124_s18   ;;  %p3126_p11 = scmp.ne.s32.totalorder %s3125_s23, 0 }
 0x879   : > { %s1654_s11 = scalar_lea.sflag [#allocation6], %s1653_s12 }
 0x87a   : > { %p2054_p5 = pnand %p3127_p9, %p3126_p11 }
 0x87c   : > { %2420 = dma.done.wait (!%p2054_p5), %s1654_s11, 128  }
 0x87d   : > { %2422 = vsyncadd (!%p2054_p5), %s1654_s11, 4294967168  ;;  %s35_s26 = sadd.s32 1, %s2445_s26   ;;  %s3128_s1 = sld [smem:[#allocation24_spill]] }
 0x87e   : > { %p32_p7 = scmp.ge.s32.totalorder %s35_s26, 4   ;;  %s3129_s23 = sld [smem:[#allocation29_spill]] }
 0x87f   : > { %s3130_s6 = sld [smem:[#allocation27_spill]]  ;;  %s3131_s21 = smov %s2429_s22 }
 0x880   : > { %s3133_s24 = smov %s2441_s25  ;;  %34 = sbr.rel (!%p32_p7) target bundleno = 20 (0x14), region = 166 }
 0x883   : > { %s3132_s22 = smov %s3128_s1 }
 0x885   : > { %s3134_s25 = smov %s3130_s6 }
 0x887   :  { %1659 = vsyncpa [#allocation5], 1 }
 0x888   :  { %1661 = vsyncpa [#allocation5 + $0x1], 1 }
 0x889   :  { %1662 = vsyncpa [#allocation8], 1 }
 0x88a   :  { %1664 = vsyncpa [#allocation8 + $0x1], 1 }
 0x88b   :  { %1665 = vsyncpa [#allocation11], 1 }
 0x88c   :  { %1667 = vsyncpa [#allocation11 + $0x1], 1 }
 0x88d   :  { %1668 = vsyncpa [#allocation14], 1 }
 0x88e   :  { %1669 = vsyncpa [#allocation6], 1 }
 0x88f   :  { %1671 = vsyncpa [#allocation6 + $0x1], 1 }

</bundles_post_ra>
